<compile_context>
chip_gen: v7x
topology: tpu7x:2x2x1
jax: 0.10.0
libtpu: 0.0.40
codegen_flags: <defaults>
</compile_context>

<pallas_src>
import jax
import jax.numpy as jnp
from jax.experimental import pallas as pl
from jax.experimental.pallas import tpu as pltpu

LANE = 128
SUBLANE = 8
TB_CAP = 2048   # rows; double-buffered working set stays << scoped VMEM


def _round_up(x, m):
    return ((x + m - 1) // m) * m


def sender_kernel(msg_ref, img_ref, wm_ref, wi_ref, b1_ref, w2_ref, b2_ref,
                  dist_ref):
    # Two input dots accumulate in f32; biases / activations stay f32.
    acc = (jnp.dot(msg_ref[...], wm_ref[...],
                   preferred_element_type=jnp.float32)
           + jnp.dot(img_ref[...], wi_ref[...],
                     preferred_element_type=jnp.float32)
           + b1_ref[...])
    h = jnp.tanh(acc)
    features = (jnp.dot(h.astype(w2_ref.dtype), w2_ref[...],
                        preferred_element_type=jnp.float32)
                + b2_ref[...])
    dist_ref[...] = jax.nn.sigmoid(features)


def init_params(key, message_in, message_out, image_in, image_out,
                binary_in, binary_out):
    """Deterministic synthetic parameters (nn.Linear-shaped, transposed)."""
    assert message_out == image_out == binary_in, \
        "h_img + h_msg requires message_out == image_out == binary_in"
    ks = jax.random.split(key, 6)
    # torch nn.Linear stores W as (out, in); we keep (in, out) for x @ W_T.
    wm = jax.random.normal(ks[0], (message_out, message_in), jnp.float32) * 0.1
    wi = jax.random.normal(ks[1], (image_out, image_in), jnp.float32) * 0.1
    wb = jax.random.normal(ks[2], (binary_out, binary_in), jnp.float32) * 0.1
    bm = jax.random.normal(ks[3], (message_out,), jnp.float32) * 0.1
    bi = jax.random.normal(ks[4], (image_out,), jnp.float32) * 0.1
    bb = jax.random.normal(ks[5], (binary_out,), jnp.float32) * 0.1
    return {
        "wm_t": wm.T, "bm": bm.reshape(1, -1),
        "wi_t": wi.T, "bi": bi.reshape(1, -1),
        "wb_t": wb.T, "bb": bb.reshape(1, -1),
    }


def prepare_params(params, compute_dtype=jnp.float32):
    """Lane-pad hidden/output dims to 128 and cast matmul weights.

    Weights are cast to `compute_dtype` (bf16 on v6e/v7x halves input-side HBM
    bytes and uses the native MXU rate); biases stay f32 so the elementwise
    math and accumulation remain f32 everywhere.
    """
    wm_t, wi_t, wb_t = params["wm_t"], params["wi_t"], params["wb_t"]
    Mi, H = wm_t.shape
    Ii = wi_t.shape[0]
    N = wb_t.shape[1]
    Hp, Np = _round_up(H, LANE), _round_up(N, LANE)

    wm = jnp.zeros((Mi, Hp), jnp.float32).at[:, :H].set(wm_t)
    wi = jnp.zeros((Ii, Hp), jnp.float32).at[:, :H].set(wi_t)
    b1 = jnp.zeros((1, Hp), jnp.float32).at[:, :H].set(
        params["bm"] + params["bi"])
    w2 = jnp.zeros((Hp, Np), jnp.float32).at[:H, :N].set(wb_t)
    b2 = jnp.zeros((1, Np), jnp.float32).at[:, :N].set(params["bb"])

    return {
        "wm": wm.astype(compute_dtype), "wi": wi.astype(compute_dtype),
        "w2": w2.astype(compute_dtype), "b1": b1, "b2": b2,
        "N": N, "Np": Np, "Hp": Hp, "compute_dtype": compute_dtype,
    }


def sender_forward(message, image, prepped):
    """Sender forward pass as a single batch-tiled Pallas kernel.

    message : (B, message_in) f32
    image   : (B, image_in)   f32
    prepped : output of prepare_params.
    Returns (outp_msg, dist), both (B, binary_out) f32.
    """
    B, Mi = message.shape
    Ii = image.shape[1]
    N, Np = prepped["N"], prepped["Np"]
    cdt = prepped["compute_dtype"]

    # Batch tile: multiple of 8 sublanes.  When B spans more than one tile,
    # aim for >= 2 grid steps (v7x has 2 TensorCores; "parallel" shards the
    # grid across them) while keeping tiles large (<= 2048 rows) to amortize
    # the ~0.35 us per-grid-step overhead.  Working set at TB=2048 is only a
    # few MiB -- far under every generation's scoped-VMEM budget.
    if B <= SUBLANE:
        TB = SUBLANE
    else:
        TB = min(_round_up(pl.cdiv(B, 2), SUBLANE), TB_CAP)
    Bp = _round_up(B, TB)

    # Batch-only zero padding (no-op when B is already a tile multiple); no
    # feature-dim padding or concat materialization on the inputs.
    pad = Bp - B
    if pad:
        message = jnp.pad(message, ((0, pad), (0, 0)))
        image = jnp.pad(image, ((0, pad), (0, 0)))
    msg_in = message.astype(cdt)
    img_in = image.astype(cdt)

    grid = (Bp // TB,)
    const = lambda i: (0, 0)   # weights/biases VMEM-resident across steps

    dist_p = pl.pallas_call(
        sender_kernel,
        out_shape=jax.ShapeDtypeStruct((Bp, Np), jnp.float32),
        grid=grid,
        in_specs=[
            pl.BlockSpec((TB, Mi), lambda i: (i, 0)),     # message: batch-tiled
            pl.BlockSpec((TB, Ii), lambda i: (i, 0)),     # image:   batch-tiled
            pl.BlockSpec(prepped["wm"].shape, const),     # resident weights
            pl.BlockSpec(prepped["wi"].shape, const),
            pl.BlockSpec(prepped["b1"].shape, const),
            pl.BlockSpec(prepped["w2"].shape, const),
            pl.BlockSpec(prepped["b2"].shape, const),
        ],
        out_specs=pl.BlockSpec((TB, Np), lambda i: (i, 0)),
        compiler_params=pltpu.CompilerParams(
            dimension_semantics=("parallel",)),
    )(msg_in, img_in, prepped["wm"], prepped["wi"], prepped["b1"],
      prepped["w2"], prepped["b2"])

    # Strip batch/lane padding, then take the cheap eval-mode round outside
    # the kernel (saves the second padded-f32 kernel output entirely).
    dist = dist_p[:B, :N]
    outp_msg = jnp.round(dist)
    return outp_msg, dist


def sender_reference(message, image, params):
    """Pure-JAX reference (unfused, unpadded) for correctness checking."""
    h_img = image @ params["wi_t"] + params["bi"]
    h_msg = message @ params["wm_t"] + params["bm"]
    features = jnp.tanh(h_img + h_msg) @ params["wb_t"] + params["bb"]
    dist = jax.nn.sigmoid(features)
    return jnp.round(dist), dist


if __name__ == "__main__":
    # Small config consistent with the module's __init__:
    #   message_in=32, message_out=32, image_in=64, image_out=32,
    #   binary_in=32, binary_out=16, batch=8
    B = 8
    message_in, message_out = 32, 32
    image_in, image_out = 64, 32
    binary_in, binary_out = 32, 16

    key = jax.random.PRNGKey(0)
    k_msg, k_img, k_par = jax.random.split(key, 3)

    message = jax.random.normal(k_msg, (B, message_in), jnp.float32)
    image = jax.random.normal(k_img, (B, image_in), jnp.float32)
    params = init_params(k_par, message_in, message_out, image_in, image_out,
                         binary_in, binary_out)

    ref_msg, ref_dist = sender_reference(message, image, params)

    # ---- f32 operand path (default; bit-friendly, v5e-safe) ----
    prepped_f32 = prepare_params(params, compute_dtype=jnp.float32)
    outp_msg, dist = sender_forward(message, image, prepped_f32)
    outp_msg = jax.block_until_ready(outp_msg)
    dist = jax.block_until_ready(dist)
    assert outp_msg.shape == (B, binary_out) and dist.shape == (B, binary_out)
    assert jnp.allclose(dist, ref_dist, atol=1e-5, rtol=1e-5)
    assert jnp.allclose(outp_msg, ref_msg)

    # ---- bf16 operand path (v6e/v7x HBM + MXU-rate win; f32 accumulation) ----
    prepped_bf16 = prepare_params(params, compute_dtype=jnp.bfloat16)
    outp_msg_b, dist_b = sender_forward(message, image, prepped_bf16)
    dist_b = jax.block_until_ready(dist_b)
    assert jnp.allclose(dist_b, ref_dist, atol=2e-2, rtol=2e-2)
    # round() only compared where dist is clearly away from the 0.5 boundary.
    safe = jnp.abs(ref_dist - 0.5) > 1e-2
    assert bool(jnp.all(jnp.where(safe, outp_msg_b == ref_msg, True)))

    print("KERNEL_OK")
</pallas_src>

<mosaic_0001>
module attributes {stable_mosaic.version = 11 : i64} {
  func.func @sender_kernel(%arg0: i32, %arg1: memref<8x32xf32, #tpu.memory_space<vmem>>, %arg2: memref<8x64xf32, #tpu.memory_space<vmem>>, %arg3: memref<32x128xf32, #tpu.memory_space<vmem>>, %arg4: memref<64x128xf32, #tpu.memory_space<vmem>>, %arg5: memref<1x128xf32, #tpu.memory_space<vmem>>, %arg6: memref<128x128xf32, #tpu.memory_space<vmem>>, %arg7: memref<1x128xf32, #tpu.memory_space<vmem>>, %arg8: memref<8x128xf32, #tpu.memory_space<vmem>>) attributes {dimension_semantics = [#tpu.dimension_semantics<parallel>], iteration_bounds = array<i64: 1>, scalar_prefetch = 0 : i64, scratch_operands = 0 : i64, tpu.core_type = #tpu.core_type<tc>, window_params = [{transform_indices = @transform_0, window_bounds = array<i64: 8, 32>}, {transform_indices = @transform_1, window_bounds = array<i64: 8, 64>}, {pipeline_mode = #tpu.pipeline_mode<synchronous>, transform_indices = @transform_2, window_bounds = array<i64: 32, 128>}, {pipeline_mode = #tpu.pipeline_mode<synchronous>, transform_indices = @transform_3, window_bounds = array<i64: 64, 128>}, {pipeline_mode = #tpu.pipeline_mode<synchronous>, transform_indices = @transform_4, window_bounds = array<i64: 1, 128>}, {pipeline_mode = #tpu.pipeline_mode<synchronous>, transform_indices = @transform_5, window_bounds = array<i64: 128, 128>}, {pipeline_mode = #tpu.pipeline_mode<synchronous>, transform_indices = @transform_6, window_bounds = array<i64: 1, 128>}, {transform_indices = @transform_7, window_bounds = array<i64: 8, 128>}]} {
    %c0 = arith.constant 0 : index
    %c0_0 = arith.constant 0 : index
    %0 = vector.load %arg1[%c0, %c0_0] : memref<8x32xf32, #tpu.memory_space<vmem>>, vector<8x32xf32>
    %c0_1 = arith.constant 0 : index
    %c0_2 = arith.constant 0 : index
    %1 = vector.load %arg3[%c0_1, %c0_2] : memref<32x128xf32, #tpu.memory_space<vmem>>, vector<32x128xf32>
    %cst = arith.constant dense<0.000000e+00> : vector<8x128xf32>
    %2 = tpu.matmul %0, %1, %cst {dimension_numbers = #tpu.dot_dimension_numbers<[1], [0], [0], [1], [0, 0, 1, 1], [], []>} : vector<8x32xf32>, vector<32x128xf32>, vector<8x128xf32> -> vector<8x128xf32>
    %c0_3 = arith.constant 0 : index
    %c0_4 = arith.constant 0 : index
    %3 = vector.load %arg2[%c0_3, %c0_4] : memref<8x64xf32, #tpu.memory_space<vmem>>, vector<8x64xf32>
    %c0_5 = arith.constant 0 : index
    %c0_6 = arith.constant 0 : index
    %4 = vector.load %arg4[%c0_5, %c0_6] : memref<64x128xf32, #tpu.memory_space<vmem>>, vector<64x128xf32>
    %cst_7 = arith.constant dense<0.000000e+00> : vector<8x128xf32>
    %5 = tpu.matmul %3, %4, %cst_7 {dimension_numbers = #tpu.dot_dimension_numbers<[1], [0], [0], [1], [0, 0, 1, 1], [], []>} : vector<8x64xf32>, vector<64x128xf32>, vector<8x128xf32> -> vector<8x128xf32>
    %6 = arith.addf %2, %5 : vector<8x128xf32>
    %c0_8 = arith.constant 0 : index
    %c0_9 = arith.constant 0 : index
    %7 = vector.load %arg5[%c0_8, %c0_9] : memref<1x128xf32, #tpu.memory_space<vmem>>, vector<1x128xf32>
    %8 = vector.broadcast %7 : vector<1x128xf32> to vector<8x128xf32>
    %9 = arith.addf %6, %8 : vector<8x128xf32>
    %10 = math.tanh %9 : vector<8x128xf32>
    %c0_10 = arith.constant 0 : index
    %c0_11 = arith.constant 0 : index
    %11 = vector.load %arg6[%c0_10, %c0_11] : memref<128x128xf32, #tpu.memory_space<vmem>>, vector<128x128xf32>
    %cst_12 = arith.constant dense<0.000000e+00> : vector<8x128xf32>
    %12 = tpu.matmul %10, %11, %cst_12 {dimension_numbers = #tpu.dot_dimension_numbers<[1], [0], [0], [1], [0, 0, 1, 1], [], []>} : vector<8x128xf32>, vector<128x128xf32>, vector<8x128xf32> -> vector<8x128xf32>
    %c0_13 = arith.constant 0 : index
    %c0_14 = arith.constant 0 : index
    %13 = vector.load %arg7[%c0_13, %c0_14] : memref<1x128xf32, #tpu.memory_space<vmem>>, vector<1x128xf32>
    %14 = vector.broadcast %13 : vector<1x128xf32> to vector<8x128xf32>
    %15 = arith.addf %12, %14 : vector<8x128xf32>
    %16 = arith.negf %15 : vector<8x128xf32>
    %17 = math.exp %16 : vector<8x128xf32>
    %cst_15 = arith.constant 1.000000e+00 : f32
    %18 = vector.broadcast %cst_15 : f32 to vector<8x128xf32>
    %19 = arith.addf %18, %17 : vector<8x128xf32>
    %20 = arith.divf %18, %19 : vector<8x128xf32>
    %c0_16 = arith.constant 0 : index
    %c0_17 = arith.constant 0 : index
    %21 = vector.load %arg8[%c0_16, %c0_17] : memref<8x128xf32, #tpu.memory_space<vmem>>, vector<8x128xf32>
    tpu.vector_store %arg8[%c0_16, %c0_17], %20 {strides = array<i32>} : memref<8x128xf32, #tpu.memory_space<vmem>>, vector<8x128xf32>,
    return
  }
  func.func @transform_0(%arg0: i32) -> (i32, i32) {
    %c0_i32 = arith.constant 0 : i32
    %c0_i32_0 = arith.constant 0 : i32
    return %arg0, %c0_i32 : i32, i32
  }
  func.func @transform_1(%arg0: i32) -> (i32, i32) {
    %c0_i32 = arith.constant 0 : i32
    %c0_i32_0 = arith.constant 0 : i32
    return %arg0, %c0_i32 : i32, i32
  }
  func.func @transform_2(%arg0: i32) -> (i32, i32) {
    %c0_i32 = arith.constant 0 : i32
    %c0_i32_0 = arith.constant 0 : i32
    %c0_i32_1 = arith.constant 0 : i32
    return %c0_i32, %c0_i32_0 : i32, i32
  }
  func.func @transform_3(%arg0: i32) -> (i32, i32) {
    %c0_i32 = arith.constant 0 : i32
    %c0_i32_0 = arith.constant 0 : i32
    %c0_i32_1 = arith.constant 0 : i32
    return %c0_i32, %c0_i32_0 : i32, i32
  }
  func.func @transform_4(%arg0: i32) -> (i32, i32) {
    %c0_i32 = arith.constant 0 : i32
    %c0_i32_0 = arith.constant 0 : i32
    %c0_i32_1 = arith.constant 0 : i32
    return %c0_i32, %c0_i32_0 : i32, i32
  }
  func.func @transform_5(%arg0: i32) -> (i32, i32) {
    %c0_i32 = arith.constant 0 : i32
    %c0_i32_0 = arith.constant 0 : i32
    %c0_i32_1 = arith.constant 0 : i32
    return %c0_i32, %c0_i32_0 : i32, i32
  }
  func.func @transform_6(%arg0: i32) -> (i32, i32) {
    %c0_i32 = arith.constant 0 : i32
    %c0_i32_0 = arith.constant 0 : i32
    %c0_i32_1 = arith.constant 0 : i32
    return %c0_i32, %c0_i32_0 : i32, i32
  }
  func.func @transform_7(%arg0: i32) -> (i32, i32) {
    %c0_i32 = arith.constant 0 : i32
    %c0_i32_0 = arith.constant 0 : i32
    return %arg0, %c0_i32 : i32, i32
  }
}

</mosaic_0001>

<bundles_post_ra>
// kernel: tpu_custom_call.1
= control target key start
LH: loop header
LB: loop body
LE: loop exit
PB: predicated region body
PF: predicated region fallthrough
CT: control target
= control target key end

     0   :  { %12 = vsyncpa [#allocation3], 0  ;;  %s834_s0 = inlined_call_operand.hbm [shape: f32[8,32], index: 0, kind: input, shape index: {}]   ;;  %s835_s1 = inlined_call_operand.hbm [shape: f32[8,64], index: 1, kind: input, shape index: {}]   ;;  %s836_s2 = inlined_call_operand.hbm [shape: f32[32,128], index: 2, kind: input, shape index: {}]   ;;  %s837_s3 = inlined_call_operand.hbm [shape: f32[64,128], index: 3, kind: input, shape index: {}]   ;;  %s838_s4 = inlined_call_operand.vmem [shape: f32[1,128], index: 4, kind: input, shape index: {}]   ;;  %s839_s5 = inlined_call_operand.hbm [shape: f32[128,128], index: 5, kind: input, shape index: {}]   ;;  %s840_s6 = inlined_call_operand.vmem [shape: f32[1,128], index: 6, kind: input, shape index: {}]   ;;  %s841_s7 = inlined_call_operand.hbm [shape: f32[8,128], index: 7, kind: output, shape index: {}]  }
   0x1   :  { %13 = vsyncpa [#allocation6], 0 }
   0x2   :  { %14 = vsyncpa [#allocation9], 0 }
   0x3   :  { %15 = vsyncpa [#allocation4], 0  ;;  %s679_s24 = smov [#allocation5]   ;;  %s539_s28 = scalar_lea.hbm %s835_s1, 128 }
   0x4   :  { %s32_s25 = sshll.u32 %s679_s24, 4  ;;  %p540_p0 = scmp.ne.s32.totalorder %s835_s1, %s539_s28  ;;  %s33_s25 = int_to_ptr.vmem [resolvable:$true] %s32_s25 }
   0x5   :  { %p543_p1 = scmp.lt.u32.totalorder %s539_s28, %s835_s1 }
   0x7   :  { %p545_p2 = pnand %p543_p1, %p540_p0 }
   0x9   :  { %548 = shalt.err (!%p545_p2)
}
   0xa   :  { %s549_s10 = scalar_lea.vmem %s33_s25, 128  ;;  %p554_p4 = scmp.lt.s32.totalorder %s33_s25, %s33_s25 }
   0xb   :  { %p550_p3 = scmp.ne.s32.totalorder %s33_s25, %s549_s10  ;;  %p555_p5 = scmp.lt.s32.totalorder %s549_s10, %s549_s10 }
   0xd   :  { %p556_p6 = por %p555_p5, %p554_p4 }
   0xf   :  { %p557_p7 = pnand %p556_p6, %p550_p3 }
  0x11   :  { %560 = shalt.err (!%p557_p7)
}
  0x12   :  { %35 = dma.hbm_to_vmem [thread:$0]  %s835_s1, 128, %s33_s25, [#allocation6]  }
  0x13   :  { %s680_s13 = smov [#allocation8]   ;;  %s681_s15 = smov [#allocation2]  }
  0x14   :  { %s53_s14 = sshll.u32 %s680_s13, 4  ;;  %s22_s16 = sshll.u32 %s681_s15, 4  ;;  %s54_s14 = int_to_ptr.vmem [resolvable:$true] %s53_s14  ;;  %s23_s16 = int_to_ptr.vmem [resolvable:$true] %s22_s16 }
  0x15   :  { %s561_s19 = scalar_lea.hbm %s837_s3, 1024 }
  0x16   :  { %p562_p8 = scmp.ne.s32.totalorder %s837_s3, %s561_s19  ;;  %p565_p9 = scmp.lt.u32.totalorder %s561_s19, %s837_s3 }
  0x18   :  { %p567_p10 = pnand %p565_p9, %p562_p8 }
  0x1a   :  { %570 = shalt.err (!%p567_p10)
}
  0x1b   :  { %s571_s1 = scalar_lea.vmem %s54_s14, 1024  ;;  %p576_p12 = scmp.lt.s32.totalorder %s54_s14, %s54_s14 }
  0x1c   :  { %p572_p11 = scmp.ne.s32.totalorder %s54_s14, %s571_s1  ;;  %p577_p13 = scmp.lt.s32.totalorder %s571_s1, %s571_s1 }
  0x1e   :  { %p578_p0 = por %p577_p13, %p576_p12 }
  0x20   :  { %p579_p1 = pnand %p578_p0, %p572_p11 }
  0x22   :  { %582 = shalt.err (!%p579_p1)
}
  0x23   :  { %s682_s24 = smov 128   ;;  %s683_s25 = smov 8  }
  0x24   :  { %59 = dma.hbm_to_vmem [thread:$0]  %s837_s3, 1024, %s54_s14, [#allocation9], %s682_s24, %s682_s24, %s683_s25  }
  0x25   :  { %s583_s30 = scalar_lea.hbm %s834_s0, 128 }
  0x26   :  { %p584_p2 = scmp.ne.s32.totalorder %s834_s0, %s583_s30  ;;  %p587_p3 = scmp.lt.u32.totalorder %s583_s30, %s834_s0 }
  0x28   :  { %p589_p4 = pnand %p587_p3, %p584_p2 }
  0x2a   :  { %592 = shalt.err (!%p589_p4)
}
  0x2b   :  { %s593_s12 = scalar_lea.vmem %s23_s16, 128  ;;  %p598_p6 = scmp.lt.s32.totalorder %s23_s16, %s23_s16 }
  0x2c   :  { %p594_p5 = scmp.ne.s32.totalorder %s23_s16, %s593_s12  ;;  %p599_p7 = scmp.lt.s32.totalorder %s593_s12, %s593_s12 }
  0x2e   :  { %p600_p8 = por %p599_p7, %p598_p6 }
  0x30   :  { %p601_p9 = pnand %p600_p8, %p594_p5 }
  0x32   :  { %604 = shalt.err (!%p601_p9)
}
  0x33   :  { %25 = dma.hbm_to_vmem [thread:$0]  %s834_s0, 128, %s23_s16, [#allocation3]  }
  0x34   :  { %s684_s14 = smov [#allocation7]   ;;  %s685_s17 = smov [#allocation10]  }
  0x35   :  { %s41_s15 = sshll.u32 %s684_s14, 4  ;;  %s67_s18 = sshll.u32 %s685_s17, 4  ;;  %s42_s15 = int_to_ptr.vmem [resolvable:$true] %s41_s15  ;;  %s68_s18 = int_to_ptr.vmem [resolvable:$true] %s67_s18 }
  0x36   :  { %s605_s21 = scalar_lea.hbm %s836_s2, 512 }
  0x37   :  { %p606_p10 = scmp.ne.s32.totalorder %s836_s2, %s605_s21  ;;  %p609_p11 = scmp.lt.u32.totalorder %s605_s21, %s836_s2 }
  0x39   :  { %p611_p12 = pnand %p609_p11, %p606_p10 }
  0x3b   :  { %614 = shalt.err (!%p611_p12)
}
  0x3c   :  { %s615_s0 = scalar_lea.vmem %s42_s15, 512  ;;  %p620_p0 = scmp.lt.s32.totalorder %s42_s15, %s42_s15 }
  0x3d   :  { %p616_p13 = scmp.ne.s32.totalorder %s42_s15, %s615_s0  ;;  %p621_p1 = scmp.lt.s32.totalorder %s615_s0, %s615_s0 }
  0x3f   :  { %p622_p2 = por %p621_p1, %p620_p0 }
  0x41   :  { %p623_p3 = pnand %p622_p2, %p616_p13 }
  0x43   :  { %626 = shalt.err (!%p623_p3)
}
  0x44   :  { %47 = dma.hbm_to_vmem [thread:$0]  %s836_s2, 512, %s42_s15, [#allocation6], %s682_s24, %s682_s24, %s683_s25  }
  0x45   :  { %s627_s30 = scalar_lea.hbm %s839_s5, 2048 }
  0x46   :  { %p628_p4 = scmp.ne.s32.totalorder %s839_s5, %s627_s30  ;;  %p631_p5 = scmp.lt.u32.totalorder %s627_s30, %s839_s5 }
  0x48   :  { %p633_p6 = pnand %p631_p5, %p628_p4 }
  0x4a   :  { %636 = shalt.err (!%p633_p6)
}
  0x4b   :  { %s637_s12 = scalar_lea.vmem %s68_s18, 2048  ;;  %p642_p8 = scmp.lt.s32.totalorder %s68_s18, %s68_s18 }
  0x4c   :  { %p638_p7 = scmp.ne.s32.totalorder %s68_s18, %s637_s12  ;;  %p643_p9 = scmp.lt.s32.totalorder %s637_s12, %s637_s12 }
  0x4e   :  { %p644_p10 = por %p643_p9, %p642_p8 }
  0x50   :  { %p645_p11 = pnand %p644_p10, %p638_p7 }
  0x52   :  { %648 = shalt.err (!%p645_p11)
}
  0x53   :  { %73 = dma.hbm_to_vmem [thread:$0]  %s839_s5, 2048, %s68_s18, [#allocation9], %s682_s24, %s682_s24, %s683_s25  }
  0x54   :  { %671 = dma.done.wait [#allocation3], 128  }
  0x55   :  { %672 = vsyncadd [#allocation3], 4294967168 }
  0x56   :  { %673 = dma.done.wait [#allocation6], 640  }
  0x57   :  { %674 = vsyncadd [#allocation6], 4294966656 }
  0x58   :  { %675 = dma.done.wait [#allocation9], 3072  }
  0x59   :  { %676 = vsyncadd [#allocation9], 4294964224  ;;  %v686_v0 = vmov 0.0|0.0   ;;  %vm687_vm0 = vmmov 0   ;;  %v688_v1 = vmov 0.0   ;;  %v97_v2 = vld [vmem:[#allocation8] sm:$0xff] }
  0x5a   :  { %480 = vmatprep.subr.bf16.mxu0 %v686_v0  ;;  %431 = vmatprep.mubr.msk.f32.mxu0 %vm687_vm0, %v688_v1  ;;  %v98_v3 = vld [vmem:[#allocation8 + $0x8] sm:$0xff]  ;;  %v99_v4 = vld [vmem:[#allocation8 + $0x10] sm:$0xff]  ;;  %v100_v6 = vld [vmem:[#allocation8 + $0x18] sm:$0xff]  ;;  %vm105_vm1 = vcmask 523264   ;;  %vm179_vm2 = vcmask 261120   ;;  %s689_s14 = smov [#allocation11]  }
  0x5b   :  { %498 = vmatprep.subr.bf16.mxu1 %v686_v0  ;;  %477 = vmatprep.mubr.msk.f32.mxu1 %vm687_vm0, %v688_v1  ;;  %v481_v5 = vpack.c.bf16 %v98_v3, %v97_v2  ;;  %v484_v7 = vpack.c.bf16 %v100_v6, %v99_v4  ;;  %v101_v8 = vld [vmem:[#allocation8 + $0x20] sm:$0xff]  ;;  %v102_v9 = vld [vmem:[#allocation8 + $0x28] sm:$0xff]  ;;  %v264_v12 = vld [vmem:[#allocation10 + $0x10] sm:$0xff] }
  0x5c   :  { %v262_v10 = vld [vmem:[#allocation10] sm:$0xff]  ;;  %v263_v11 = vld [vmem:[#allocation10 + $0x8] sm:$0xff]  ;;  %v265_v13 = vld [vmem:[#allocation10 + $0x18] sm:$0xff]  ;;  %v487_v15 = vpack.c.bf16 %v102_v9, %v101_v8 }
  0x5d   :  { %482 = vmatpush3.bf16.msra.mxu0 %v481_v5  ;;  %v499_v14 = vpack.c.bf16 %v263_v11, %v262_v10  ;;  %v103_v16 = vld [vmem:[#allocation8 + $0x30] sm:$0xff]  ;;  %v104_v17 = vld [vmem:[#allocation8 + $0x38] sm:$0xff]  ;;  %v502_v18 = vpack.c.bf16 %v265_v13, %v264_v12  ;;  %v92_v20 = vld [vmem:[#allocation7] sm:$0xff] }
  0x5e   :  { %483 = vmatprep.subr.bf16.mxu0 %v686_v0  ;;  %v490_v19 = vpack.c.bf16 %v104_v17, %v103_v16  ;;  %v93_v21 = vld [vmem:[#allocation7 + $0x8] sm:$0xff]  ;;  %v96_v22 = vld [vmem:[#allocation5] sm:$0xff]  ;;  %v94_v24 = vld [vmem:[#allocation7 + $0x10] sm:$0xff] }
  0x5f   :  { %500 = vmatpush3.bf16.msra.mxu1 %v499_v14  ;;  %v493_v23 = vpack.c.bf16 %v93_v21, %v92_v20  ;;  %v95_v25 = vld [vmem:[#allocation7 + $0x18] sm:$0xff]  ;;  %v91_v27 = vld [vmem:[#allocation2] sm:$0xff]  ;;  %v266_v28 = vld [vmem:[#allocation10 + $0x20] sm:$0xff] }
  0x60   :  { %501 = vmatprep.subr.bf16.mxu1 %v686_v0  ;;  %v496_v26 = vpack.c.bf16 %v95_v25, %v94_v24  ;;  %v267_v29 = vld [vmem:[#allocation10 + $0x28] sm:$0xff]  ;;  %v268_v31 = vld [vmem:[#allocation10 + $0x30] sm:$0xff]  ;;  %v269_v32 = vld [vmem:[#allocation10 + $0x38] sm:$0xff] }
  0x61   :  { %485 = vmatpush3.bf16.msra.mxu0 %v484_v7  ;;  %v505_v30 = vpack.c.bf16 %v267_v29, %v266_v28  ;;  %v508_v33 = vpack.c.bf16 %v269_v32, %v268_v31  ;;  %v270_v34 = vld [vmem:[#allocation10 + $0x40] sm:$0xff]  ;;  %v271_v35 = vld [vmem:[#allocation10 + $0x48] sm:$0xff]  ;;  %v272_v37 = vld [vmem:[#allocation10 + $0x50] sm:$0xff] }
  0x62   :  { %486 = vmatprep.subr.bf16.mxu0 %v686_v0  ;;  %v511_v36 = vpack.c.bf16 %v271_v35, %v270_v34  ;;  %v273_v38 = vld [vmem:[#allocation10 + $0x58] sm:$0xff]  ;;  %v274_v40 = vld [vmem:[#allocation10 + $0x60] sm:$0xff]  ;;  %v275_v41 = vld [vmem:[#allocation10 + $0x68] sm:$0xff] }
  0x63   :  { %503 = vmatpush3.bf16.msra.mxu1 %v502_v18  ;;  %v514_v39 = vpack.c.bf16 %v273_v38, %v272_v37  ;;  %v517_v42 = vpack.c.bf16 %v275_v41, %v274_v40  ;;  %v276_v43 = vld [vmem:[#allocation10 + $0x70] sm:$0xff]  ;;  %v277_v44 = vld [vmem:[#allocation10 + $0x78] sm:$0xff] }
  0x64   :  { %504 = vmatprep.subr.bf16.mxu1 %v686_v0  ;;  %v520_v45 = vpack.c.bf16 %v277_v44, %v276_v43  ;;  %v381_v49 = vld [vmem:[%s838_s4] ss:$0 sm:$0xff]  ;;  %s368_s4 = sshll.u32 %s689_s14, 4  ;;  %s369_s4 = int_to_ptr.vmem [resolvable:$true] %s368_s4 }
  0x65   :  { %488 = vmatpush3.bf16.msra.mxu0 %v487_v15  ;;  %v382_v54 = vld [vmem:[%s840_s6] ss:$0 sm:$0xff]  ;;  %s649_s15 = scalar_lea.vmem %s369_s4, 128  ;;  %p654_p13 = scmp.lt.s32.totalorder %s369_s4, %s369_s4 }
  0x66   :  { %489 = vmatprep.subr.bf16.mxu0 %v686_v0  ;;  %p650_p12 = scmp.ne.s32.totalorder %s369_s4, %s649_s15  ;;  %p655_p0 = scmp.lt.s32.totalorder %s649_s15, %s649_s15 }
  0x67   :  { %506 = vmatpush3.bf16.msra.mxu1 %v505_v30 }
  0x68   :  { %507 = vmatprep.subr.bf16.mxu1 %v686_v0  ;;  %p656_p1 = por %p655_p0, %p654_p13 }
  0x69   :  { %491 = vmatpush3.bf16.msra.mxu0 %v490_v19 }
  0x6a   :  { %492 = vmatprep.subr.bf16.mxu0 %v686_v0  ;;  %p657_p2 = pnand %p656_p1, %p650_p12 }
  0x6b   :  { %509 = vmatpush3.bf16.msra.mxu1 %v508_v33 }
  0x6c   :  { %432 = vmatmul.mubr.msk.f32.vlgmr.msra.gmra.mrb[0].mxu0 %vm105_vm1, %v96_v22  ;;  %510 = vmatprep.subr.bf16.mxu1 %v686_v0 }
  0x6d   :  { %494 = vmatpush3.bf16.msra.mxu0 %v493_v23  ;;  %442 = vmatprep.mubr.msk.f32.mxu0 %vm687_vm0, %v688_v1 }
  0x6e   :  { %495 = vmatprep.subr.bf16.mxu0 %v686_v0 }
  0x6f   :  { %512 = vmatpush3.bf16.msra.mxu1 %v511_v36 }
  0x70   :  { %513 = vmatprep.subr.bf16.mxu1 %v686_v0 }
  0x71   :  { %497 = vmatpush3.bf16.msra.mxu0 %v496_v26 }
  0x73   :  { %515 = vmatpush3.bf16.msra.mxu1 %v514_v39 }
  0x74   :  { %443 = vmatmul.mubr.msk.f32.vlgmr.msra.gmra.mrb[2].mxu0 %vm179_vm2, %v91_v27  ;;  %516 = vmatprep.subr.bf16.mxu1 %v686_v0 }
  0x77   :  { %518 = vmatpush3.bf16.msra.mxu1 %v517_v42 }
  0x78   :  { %519 = vmatprep.subr.bf16.mxu1 %v686_v0 }
  0x7b   :  { %521 = vmatpush3.bf16.msra.mxu1 %v520_v45 }
 0x13f   :  { %v175_v46 = vpop.f32.mrb[0].mxu0 }
 0x140   :  { %v433_v47 = vpop.f32.mrb[1].mxu0 }
 0x147   :  { %v249_v48 = vpop.f32.mrb[2].mxu0 }
 0x148   :  { %v250_v50 = vadd.f32 %v249_v48, %v175_v46  ;;  %v444_v51 = vpop.f32.mrb[3].mxu0 }
 0x14a   :  { %v260_v52 = vadd.f32 %v381_v49, %v250_v50 }
 0x14c   :  { %533 = vtanh.f32 %v260_v52 }
 0x156   :  { %v534_v53 = vpop.eup %533 }
 0x157   :  { %478 = vmatmul.mubr.f32.vlgmr.msra.gmra.mrb[0].mxu1 %v534_v53 }
 0x22a   :  { %v351_v55 = vpop.f32.mrb[0].mxu1 }
 0x22b   :  { %v352_v56 = vadd.f32 %v382_v54, %v351_v55  ;;  %v479_v57 = vpop.f32.mrb[1].mxu1 }
 0x22d   :  { %v383_v58 = vmul.f32 -1.442695, %v352_v56 }
 0x22f   :  { %535 = vpow2.f32 %v383_v58 }
 0x239   :  { %v536_v59 = vpop.eup %535 }
 0x23a   :  { %v358_v60 = vadd.f32 1.0, %v536_v59 }
 0x23c   :  { %537 = vrcp.f32 %v358_v60 }
 0x246   :  { %v538_v61 = vpop.eup %537 }
 0x247   :  { %361 = vst [vmem:[#allocation11] sm:$0xff] %v538_v61 }
 0x248   :  { %660 = shalt.err (!%p657_p2)
}
 0x249   :  { %s661_s18 = scalar_lea.hbm %s841_s7, 128 }
 0x24a   :  { %p662_p3 = scmp.ne.s32.totalorder %s841_s7, %s661_s18  ;;  %p665_p4 = scmp.lt.u32.totalorder %s661_s18, %s841_s7 }
 0x24c   :  { %p667_p5 = pnand %p665_p4, %p662_p3 }
 0x24e   :  { %670 = shalt.err (!%p667_p5)
}
 0x24f   :  { %371 = dma.vmem_to_hbm [thread:$0]  %s369_s4, 128, %s841_s7, [#allocation4]  }
 0x250   :  { %677 = dma.done.wait [#allocation4], 128  }
 0x251   :  { %678 = vsyncadd [#allocation4], 4294967168 }
 0x252   :  { %375 = vsyncpa [#allocation3], 1 }
 0x253   :  { %376 = vsyncpa [#allocation6], 1 }
 0x254   :  { %377 = vsyncpa [#allocation9], 1 }
 0x255   :  { %378 = vsyncpa [#allocation4], 1 }

</bundles_post_ra>
